<compile_context>
chip_gen: v5e
topology: v5e:2x2
jax: 0.10.0
libtpu: 0.0.40
codegen_flags: <defaults>
</compile_context>

<pallas_src>
import functools

import jax
import jax.numpy as jnp
from jax import lax
from jax.experimental import pallas as pl
from jax.experimental.pallas import tpu as pltpu


def _round_up(x, m):
    return (x + m - 1) // m * m


def _cdiv(a, b):
    return (a + b - 1) // b


def _downsample_kernel(x_ref, w_ref, b_ref, o_ref, *, TH, Wot, Kp, TCo, NJ):
    # x_ref: (TH, Wot, Kp)   bf16 fused tap slab, K index = (kh*3+kw)*C + ci
    # w_ref: (Kp, Cop)       bf16 fused weight, fully VMEM-resident
    # b_ref: (1, TCo)        f32 bias tile
    # o_ref: (TH, Wot, TCo)  output tile
    M = TH * Wot
    lhs = x_ref[...].reshape(M, Kp)                 # contiguous, layout-preserving
    if NJ == 1:
        w = w_ref[...]
    else:
        col = pl.multiple_of(pl.program_id(1) * TCo, TCo)
        w = w_ref[:, pl.ds(col, TCo)]               # 128-aligned column slice
    acc = jnp.dot(lhs, w, preferred_element_type=jnp.float32)
    acc = acc + b_ref[...]                          # (1, TCo) broadcast over rows
    o_ref[...] = acc.reshape(TH, Wot, TCo).astype(o_ref.dtype)


def downsample_pallas(x_nchw, weight_oihw, bias):
    """Conv2d(dim, dim, 3, stride=2, padding=1) matching PyTorch semantics.

    x_nchw:      (B, C, H, W)  float32
    weight_oihw: (C, C, 3, 3)  float32 (PyTorch layout: out, in, kh, kw)
    bias:        (C,)          float32
    returns:     (B, C, Ho, Wo) with Ho = floor((H-1)/2)+1, Wo likewise.
    """
    B, C, H, W = x_nchw.shape
    Ho = (H - 1) // 2 + 1
    Wo = (W - 1) // 2 + 1

    Cop = _round_up(C, 128)          # padded Cout (lane dim of output)
    Kp = _round_up(9 * C, 128)       # tightly packed fused contraction dim
    Wot = _round_up(Wo, 8)           # sublane-aligned output width

    # Accumulator M cap: 512 rows amortizes per-grid-step overhead while the
    # f32 accumulator (<=512*TCo*4 bytes) stays comfortably in VMEM on v7x.
    M_CAP = 512
    TH = max(1, min(Ho, M_CAP // Wot))
    # v7x has 2 TCs fed by sharding parallel grid axes: make sure the leading
    # (merged batch*rows) axis has >=2 steps whenever possible.
    while TH > 1 and B * _cdiv(Ho, TH) < 2:
        TH = _cdiv(TH, 2)
    Hot = _round_up(Ho, TH)

    if Cop <= 512:
        TCo = Cop                    # no Cout tiling: whole width per step
    elif Cop % 256 == 0:
        TCo = 256
    else:
        TCo = 128
    NJ = Cop // TCo

    # ---- one-off glue (XLA): layout, bf16 cast, halo + alignment pad, and the
    # stride-2 phase gather that builds the fused 9-tap slab. ----
    x_nhwc = jnp.transpose(x_nchw, (0, 2, 3, 1)).astype(jnp.bfloat16)
    x_pad = jnp.pad(
        x_nhwc, ((0, 0), (1, 2 * Hot - H), (1, 2 * Wot - W), (0, 0)))
    # taps[b, r, ow, (kh*3+kw)*C + ci] = x_pad[b, 2*r + kh, 2*ow + kw, ci]
    taps9 = []
    for kh in range(3):
        xh = x_pad[:, kh:kh + 2 * Hot - 1:2]                  # (B, Hot, Wpad, C)
        for kw in range(3):
            taps9.append(xh[:, :, kw:kw + 2 * Wot - 1:2, :])  # (B, Hot, Wot, C)
    taps = jnp.concatenate(taps9, axis=-1)                    # (B, Hot, Wot, 9*C)
    taps = jnp.pad(taps, ((0, 0), (0, 0), (0, 0), (0, Kp - 9 * C)))
    taps = taps.reshape(B * Hot, Wot, Kp)

    # weight: (co, ci, kh, kw) -> (kh, kw, ci, co) -> (9*C, C), K-index matches taps.
    w_hwio = jnp.transpose(weight_oihw, (2, 3, 1, 0)).reshape(9 * C, C)
    w_fused = jnp.pad(w_hwio, ((0, Kp - 9 * C), (0, Cop - C))).astype(jnp.bfloat16)
    b2d = jnp.pad(bias.astype(jnp.float32), (0, Cop - C)).reshape(1, Cop)

    grid = (B * Hot // TH, NJ)

    # VMEM budget: double-buffered in/out/bias tiles + resident weight (counted
    # twice for safety) + the f32 accumulator.  `needed` already includes the
    # double-buffer factor; add a fixed margin, clamp at 48 MiB (v7x-safe).
    out_itemsize = jnp.dtype(x_nchw.dtype).itemsize
    in_tile = TH * Wot * Kp * 2
    w_bytes = Kp * Cop * 2
    o_tile = TH * Wot * TCo * out_itemsize
    bias_bytes = TCo * 4
    acc_bytes = TH * Wot * TCo * 4
    needed = 2 * (in_tile + o_tile + bias_bytes) + 2 * w_bytes + acc_bytes
    vmem_limit = int(min(max(needed + (8 << 20), 16 << 20), 48 << 20))

    flops = 2 * (B * Hot) * Wot * Kp * Cop
    bytes_accessed = int(taps.size * 2 + w_fused.size * 2 + b2d.size * 4
                         + B * Hot * Wot * Cop * out_itemsize)

    kernel = functools.partial(_downsample_kernel,
                               TH=TH, Wot=Wot, Kp=Kp, TCo=TCo, NJ=NJ)

    out_flat = pl.pallas_call(
        kernel,
        out_shape=jax.ShapeDtypeStruct((B * Hot, Wot, Cop), x_nchw.dtype),
        grid_spec=pltpu.PrefetchScalarGridSpec(
            num_scalar_prefetch=0,
            grid=grid,
            in_specs=[
                pl.BlockSpec((TH, Wot, Kp), lambda i, j: (i, 0, 0)),
                pl.BlockSpec((Kp, Cop), lambda i, j: (0, 0)),   # resident weight
                pl.BlockSpec((1, TCo), lambda i, j: (0, j)),
            ],
            out_specs=pl.BlockSpec((TH, Wot, TCo), lambda i, j: (i, 0, j)),
        ),
        compiler_params=pltpu.CompilerParams(
            dimension_semantics=("parallel", "parallel"),
            vmem_limit_bytes=vmem_limit),
        cost_estimate=pl.CostEstimate(
            flops=flops, transcendentals=0, bytes_accessed=bytes_accessed),
    )(taps, w_fused, b2d)

    out = out_flat.reshape(B, Hot, Wot, Cop)[:, :Ho, :Wo, :C]
    return jnp.transpose(out, (0, 3, 1, 2))


def _reference_conv(x_nchw, weight_oihw, bias):
    out = lax.conv_general_dilated(
        x_nchw, weight_oihw,
        window_strides=(2, 2),
        padding=((1, 1), (1, 1)),
        dimension_numbers=("NCHW", "OIHW", "NCHW"),
        precision=lax.Precision.HIGHEST)
    return out + bias.reshape(1, -1, 1, 1)


if __name__ == "__main__":
    B, C, H, W = 2, 4, 16, 16
    key = jax.random.PRNGKey(0)
    kx, kw_, kb = jax.random.split(key, 3)

    x = jax.random.normal(kx, (B, C, H, W), dtype=jnp.float32)
    # Deterministic parameter init mimicking nn.Conv2d's uniform(-bound, bound)
    fan_in = C * 3 * 3
    bound = 1.0 / (fan_in ** 0.5)
    weight = jax.random.uniform(kw_, (C, C, 3, 3), jnp.float32, -bound, bound)
    bias = jax.random.uniform(kb, (C,), jnp.float32, -bound, bound)

    out = jax.block_until_ready(downsample_pallas(x, weight, bias))

    Ho = (H - 1) // 2 + 1
    Wo = (W - 1) // 2 + 1
    assert out.shape == (B, C, Ho, Wo)

    # Primary check: reference with the SAME bf16 operand quantization as the
    # kernel (f32 accumulation in both), so tolerances stay tight.
    xq = x.astype(jnp.bfloat16).astype(jnp.float32)
    wq = weight.astype(jnp.bfloat16).astype(jnp.float32)
    ref_q = jax.block_until_ready(_reference_conv(xq, wq, bias))
    assert jnp.allclose(out, ref_q, atol=2e-3, rtol=2e-3), \
        "mismatch vs bf16-quantized lax conv reference"

    # Loose sanity check against the full-f32 reference (bf16 operand rounding).
    ref_f32 = jax.block_until_ready(_reference_conv(x, weight, bias))
    assert jnp.allclose(out, ref_f32, atol=5e-2, rtol=5e-2), \
        "mismatch vs f32 lax conv reference"

    print("KERNEL_OK")
</pallas_src>

<mosaic_0001>
module attributes {stable_mosaic.version = 11 : i64} {
  func.func @_downsample_kernel(%arg0: i32, %arg1: i32, %arg2: memref<8x8x128xbf16, #tpu.memory_space<vmem>>, %arg3: memref<128x128xbf16, #tpu.memory_space<vmem>>, %arg4: memref<1x128xf32, #tpu.memory_space<vmem>>, %arg5: memref<8x8x128xf32, #tpu.memory_space<vmem>>) attributes {dimension_semantics = [#tpu.dimension_semantics<parallel>, #tpu.dimension_semantics<parallel>], iteration_bounds = array<i64: 2, 1>, scalar_prefetch = 0 : i64, scratch_operands = 0 : i64, tpu.core_type = #tpu.core_type<tc>, window_params = [{transform_indices = @transform_0, window_bounds = array<i64: 8, 8, 128>}, {pipeline_mode = #tpu.pipeline_mode<synchronous>, transform_indices = @transform_1, window_bounds = array<i64: 128, 128>}, {transform_indices = @transform_2, window_bounds = array<i64: 1, 128>}, {transform_indices = @transform_3, window_bounds = array<i64: 8, 8, 128>}]} {
    %c0 = arith.constant 0 : index
    %c0_0 = arith.constant 0 : index
    %c0_1 = arith.constant 0 : index
    %0 = vector.load %arg2[%c0, %c0_0, %c0_1] : memref<8x8x128xbf16, #tpu.memory_space<vmem>>, vector<8x8x128xbf16>
    %1 = vector.shape_cast %0 : vector<8x8x128xbf16> to vector<64x128xbf16>
    %c0_2 = arith.constant 0 : index
    %c0_3 = arith.constant 0 : index
    %2 = vector.load %arg3[%c0_2, %c0_3] : memref<128x128xbf16, #tpu.memory_space<vmem>>, vector<128x128xbf16>
    %cst = arith.constant dense<0.000000e+00> : vector<64x128xf32>
    %3 = tpu.matmul %1, %2, %cst {dimension_numbers = #tpu.dot_dimension_numbers<[1], [0], [0], [1], [0, 0, 1, 1], [], []>} : vector<64x128xbf16>, vector<128x128xbf16>, vector<64x128xf32> -> vector<64x128xf32>
    %c0_4 = arith.constant 0 : index
    %c0_5 = arith.constant 0 : index
    %4 = vector.load %arg4[%c0_4, %c0_5] : memref<1x128xf32, #tpu.memory_space<vmem>>, vector<1x128xf32>
    %5 = vector.broadcast %4 : vector<1x128xf32> to vector<64x128xf32>
    %6 = arith.addf %3, %5 : vector<64x128xf32>
    %7 = vector.shape_cast %6 : vector<64x128xf32> to vector<8x8x128xf32>
    %c0_6 = arith.constant 0 : index
    %c0_7 = arith.constant 0 : index
    %c0_8 = arith.constant 0 : index
    %8 = vector.load %arg5[%c0_6, %c0_7, %c0_8] : memref<8x8x128xf32, #tpu.memory_space<vmem>>, vector<8x8x128xf32>
    tpu.vector_store %arg5[%c0_6, %c0_7, %c0_8], %7 {strides = array<i32>} : memref<8x8x128xf32, #tpu.memory_space<vmem>>, vector<8x8x128xf32>,
    return
  }
  func.func @transform_0(%arg0: i32, %arg1: i32) -> (i32, i32, i32) {
    %c0_i32 = arith.constant 0 : i32
    %c0_i32_0 = arith.constant 0 : i32
    %c0_i32_1 = arith.constant 0 : i32
    return %arg0, %c0_i32, %c0_i32_0 : i32, i32, i32
  }
  func.func @transform_1(%arg0: i32, %arg1: i32) -> (i32, i32) {
    %c0_i32 = arith.constant 0 : i32
    %c0_i32_0 = arith.constant 0 : i32
    %c0_i32_1 = arith.constant 0 : i32
    return %c0_i32, %c0_i32_0 : i32, i32
  }
  func.func @transform_2(%arg0: i32, %arg1: i32) -> (i32, i32) {
    %c0_i32 = arith.constant 0 : i32
    %c0_i32_0 = arith.constant 0 : i32
    return %c0_i32, %arg1 : i32, i32
  }
  func.func @transform_3(%arg0: i32, %arg1: i32) -> (i32, i32, i32) {
    %c0_i32 = arith.constant 0 : i32
    %c0_i32_0 = arith.constant 0 : i32
    return %arg0, %c0_i32, %arg1 : i32, i32, i32
  }
}

</mosaic_0001>

<bundles_post_ra>
// kernel: tpu_custom_call.1
= control target key start
LH: loop header
LB: loop body
LE: loop exit
PB: predicated region body
PF: predicated region fallthrough
CT: control target
= control target key end

     0   :  { %s1017_s0 = inlined_call_operand.hbm [shape: bf16[16,8,128], index: 0, kind: input, shape index: {}]   ;;  %s1018_s1 = inlined_call_operand.hbm [shape: bf16[128,128], index: 1, kind: input, shape index: {}]   ;;  %s1019_s2 = inlined_call_operand.vmem [shape: f32[1,128], index: 2, kind: input, shape index: {}]   ;;  %s1020_s3 = inlined_call_operand.hbm [shape: f32[16,8,128], index: 3, kind: output, shape index: {}]  }
   0x1   :  { %1022 = sst [smem:[#allocation11_spill]] %s1018_s1 }
   0x2   :  { %8 = vsyncpa [#allocation3], 0 }
   0x3   :  { %10 = vsyncpa [#allocation3 + $0x1], 0 }
   0x4   :  { %11 = vsyncpa [#allocation6], 0 }
   0x5   :  { %12 = vsyncpa [#allocation4], 0 }
   0x6   :  { %14 = vsyncpa [#allocation4 + $0x1], 0  ;;  %s852_s12 = smov 0   ;;  %s854_s13 = smov 0  }
   0x7   :  { %s856_s14 = smov 0   ;;  %s858_s15 = smov 0  }
   0x8   :  { %s860_s16 = smov 0   ;;  %s862_s17 = smov 0  }
   0x9 LB: > { %s497_s18 = sadd.s32 4294967295, %s825_s17   ;;  %s498_s19 = sadd.s32 4294967294, %s825_s17   ;;  %s825_s17 = sphi %s862_s17, %s20_s17   ;;  %s821_s16 = sphi %s860_s16, %s1036_s16   ;;  %s817_s15 = sphi %s858_s15, %s1035_s15   ;;  %s813_s14 = sphi %s856_s14, %s1034_s14   ;;  %s809_s13 = sphi %s854_s13, %s1033_s13   ;;  %s805_s12 = sphi %s852_s12, %s1032_s12  }
   0xa   : > { %p52_p0 = scmp.ne.s32.totalorder %s809_s13, %s805_s12  ;;  %p886_p1 = scmp.eq.s32.totalorder %s497_s18, 0 }
   0xb   : > { %p890_p2 = scmp.eq.s32.totalorder %s497_s18, 1  ;;  %p131_p3 = scmp.eq.s32.totalorder %s498_s19, 1 }
   0xc   : > { %p896_p4 = por %p886_p1, %p52_p0  ;;  %p499_p5 = scmp.ge.s32.totalorder %s825_s17, 1 }
   0xd   : > { %p901_p6 = por %p131_p3, %p52_p0  ;;  %p138_p7 = scmp.lt.s32.totalorder %s825_s17, 3 }
   0xe   : > { %s1027_s1 = sld [smem:[#allocation11_spill]]  ;;  %s827_s28 = smov [#allocation5]  }
   0xf   : > { %p909_p8 = pnand %p499_p5, %p138_p7  ;;  %s151_s29 = sshll.u32 %s827_s28, 4  ;;  %s152_s29 = int_to_ptr.vmem [resolvable:$true] %s151_s29 }
  0x10   : > { %p502_p11 = scmp.ge.s32.totalorder %s825_s17, 2  ;;  %s1021_s30 = smov 64  }
  0x11   : > { %p609_p9 = pneg %p909_p8  ;;  %s829_s4 = smov 4  }
  0x12   : > { %s32_s5 = sadd.s32 1, %s821_s16  ;;  %s39_s6 = sadd.s32 1, %s813_s14 }
  0x13   : > { %p610_p10 = pnand %p609_p9, %p886_p1  ;;  %p34_p12 = scmp.ge.s32.totalorder %s32_s5, 2 }
  0x14   : > { %s149_s26 = sshll.u32 %s1027_s1, 4  ;;  %p46_p13 = scmp.ne.s32.totalorder %s813_s14, %s809_s13  ;;  %s150_s26 = int_to_ptr.hbm [resolvable:$true] %s149_s26 }
  0x15   : > { %612 = dma.hbm_to_vmem [thread:$0]  (!%p610_p10), %s150_s26, 1024, %s152_s29, [#allocation6], %s1021_s30, %s1021_s30, %s829_s4  }
  0x16   : > { %p47_p0 = scmp.eq.s32.totalorder %s825_s17, 0  ;;  %s1038_s5 = smov (%p34_p12, %s32_s5), 0 }
  0x17   : > { %p934_p5 = por %p890_p2, %p46_p13  ;;  %s36_s9 = ssub.s32 %s821_s16, %s1038_s5 }
  0x18   : > { %p928_p3 = por %p47_p0, %p46_p13  ;;  %p622_p7 = scmp.lt.s32.totalorder %s825_s17, 2 }
  0x19   : > { %p37_p9 = scmp.eq.s32.totalorder %s36_s9, 0  ;;  %s171_s10 = sand.u32 1, %s813_s14  }
  0x1a   : > { %s503_s11 = sshll.u32 %s171_s10, 5  ;;  %s563_s19 = sshll.u32 %s821_s16, 5 }
  0x1b   : > { %s943_s18 = scalar_select %p37_p9, %s813_s14, %s39_s6  }
  0x1c   : > { %s180_s26 = scalar_lea.hbm %s1017_s0, %s563_s19  ;;  %s175_s28 = scalar_lea.vmem [#allocation2], %s503_s11 }
  0x1d   : > { %s183_s29 = sshll.u32 %s175_s28, 4  ;;  %s181_s21 = sshll.u32 %s180_s26, 4  ;;  %s184_s29 = int_to_ptr.vmem [resolvable:$true] %s183_s29  ;;  %s182_s21 = int_to_ptr.hbm [resolvable:$true] %s181_s21 }
  0x1e   : > { %p614_p2 = pnand %p622_p7, %p928_p3  ;;  %s172_s30 = scalar_lea.sflag [#allocation3], %s171_s10 }
  0x1f   : > { %s1031_s1 = smov 64   ;;  %195 = sbr.rel (%p909_p8) target bundleno = 219 (0xdb), region = 32 }
  0x20   : > { %616 = dma.hbm_to_vmem [thread:$0]  (!%p614_p2), %s182_s21, 512, %s184_s29, %s172_s30, %s1031_s1, %s1031_s1, %s829_s4  }
  0x21   : > { %s957_s6 = sand.u32 (!%p909_p8), 1, %s809_s13  }
  0x22   : > { %s507_s9 = sshll.u32 (!%p909_p8), %s957_s6, 5  ;;  %s198_s11 = scalar_lea.sflag (!%p909_p8), [#allocation3], %s957_s6 }
  0x23   : > { %s961_s19 = scalar_lea.vmem (!%p909_p8), [#allocation2], %s507_s9 }
  0x24   : > { %792 = dma.done.wait (%p896_p4), %s198_s11, 512  }
  0x25   : > { %794 = vsyncadd (%p896_p4), %s198_s11, 4294966784 }
  0x26   : > { %796 = dma.done.wait (%p886_p1), [#allocation6], 1024  }
  0x27   : > { %798 = vsyncadd (%p886_p1), [#allocation6], 4294966272  ;;  %v575_v0 = vld [vmem:[#allocation5 + $0x38] sm:$0xff]  ;;  %v574_v1 = vld [vmem:[#allocation5 + $0x30] sm:$0xff]  ;;  %s509_s1 = sshll.u32 %s957_s6, 6  ;;  %s576_s30 = sshll.u32 %s817_s15, 6 }
  0x28   : > { %338 = vmatpush.bf16.msra.mxu0 %v575_v0  ;;  %577 = vmatpush.bf16.msra.mxu1 %v575_v0  ;;  %v573_v2 = vld [vmem:[#allocation5 + $0x28] sm:$0xff]  ;;  %v572_v3 = vld [vmem:[#allocation5 + $0x20] sm:$0xff]  ;;  %v571_v4 = vld [vmem:[#allocation5 + $0x18] sm:$0xff]  ;;  %s232_s27 = scalar_lea.vmem [#allocation7], %s509_s1  ;;  %s388_s10 = scalar_lea.hbm %s1020_s3, %s576_s30 }
  0x29   : > { %578 = vmatpush.bf16.msra.mxu2 %v575_v0  ;;  %579 = vmatpush.bf16.msra.mxu3 %v575_v0  ;;  %v570_v5 = vld [vmem:[#allocation5 + $0x10] sm:$0xff]  ;;  %v569_v6 = vld [vmem:[#allocation5 + $0x8] sm:$0xff]  ;;  %v568_v7 = vld [vmem:[#allocation5] sm:$0xff]  ;;  %s389_s24 = sshll.u32 %s232_s27, 4  ;;  %s391_s25 = sshll.u32 %s388_s10, 4  ;;  %s390_s24 = int_to_ptr.vmem [resolvable:$true] %s389_s24  ;;  %s392_s25 = int_to_ptr.hbm [resolvable:$true] %s391_s25 }
  0x2a   : > { %v564_v8 = vld [vmem:[%s961_s19] sm:$0xff]  ;;  %v565_v9 = vld [vmem:[%s961_s19 + $0x8] sm:$0xff]  ;;  %v566_v10 = vld [vmem:[%s961_s19 + $0x10] sm:$0xff]  ;;  %s376_s15 = scalar_lea.sflag [#allocation4], %s957_s6  ;;  %s753_s26 = sshra.s32 %s392_s25, 4  ;;  %s754_s26 = int_to_ptr.hbm [resolvable:$true] %s753_s26 }
  0x2b   : > { %v567_v11 = vld [vmem:[%s961_s19 + $0x18] sm:$0xff]  ;;  %v678_v12 = vld [vmem:[%s1019_s2] ss:$0 sm:$0xff]  ;;  %s755_s28 = scalar_lea.hbm %s754_s26, 64  ;;  %s759_s9 = scalar_lea.hbm %s1020_s3, 128 }
  0x2c   : > { %339 = vmatpush.bf16.msra.mxu0 %v574_v1  ;;  %580 = vmatpush.bf16.msra.mxu1 %v574_v1  ;;  %p756_p1 = scmp.ne.s32.totalorder %s754_s26, %s755_s28  ;;  %p760_p10 = scmp.lt.s32.totalorder %s754_s26, %s1020_s3 }
  0x2d   : > { %581 = vmatpush.bf16.msra.mxu2 %v574_v1  ;;  %582 = vmatpush.bf16.msra.mxu3 %v574_v1  ;;  %p761_p12 = scmp.lt.s32.totalorder %s759_s9, %s755_s28 }
  0x2e   : > { %p757_p4 = pnand %p756_p1, %p934_p5 }
  0x2f   : > { %p762_p13 = por %p761_p12, %p760_p10 }
  0x30   : > { %340 = vmatpush.bf16.msra.mxu0 %v573_v2  ;;  %583 = vmatpush.bf16.msra.mxu1 %v573_v2  ;;  %p758_p8 = pneg %p757_p4 }
  0x31   : > { %584 = vmatpush.bf16.msra.mxu2 %v573_v2  ;;  %585 = vmatpush.bf16.msra.mxu3 %v573_v2 }
  0x32   : > { %p763_p0 = pnand %p762_p13, %p758_p8 }
  0x34   : > { %341 = vmatpush.bf16.msra.mxu0 %v572_v3  ;;  %586 = vmatpush.bf16.msra.mxu1 %v572_v3 }
  0x35   : > { %587 = vmatpush.bf16.msra.mxu2 %v572_v3  ;;  %588 = vmatpush.bf16.msra.mxu3 %v572_v3 }
  0x38   : > { %342 = vmatpush.bf16.msra.mxu0 %v571_v4  ;;  %589 = vmatpush.bf16.msra.mxu1 %v571_v4 }
  0x39   : > { %590 = vmatpush.bf16.msra.mxu2 %v571_v4  ;;  %591 = vmatpush.bf16.msra.mxu3 %v571_v4 }
  0x3c   : > { %343 = vmatpush.bf16.msra.mxu0 %v570_v5  ;;  %592 = vmatpush.bf16.msra.mxu1 %v570_v5 }
  0x3d   : > { %593 = vmatpush.bf16.msra.mxu2 %v570_v5  ;;  %594 = vmatpush.bf16.msra.mxu3 %v570_v5 }
  0x40   : > { %344 = vmatpush.bf16.msra.mxu0 %v569_v6  ;;  %595 = vmatpush.bf16.msra.mxu1 %v569_v6 }
  0x41   : > { %596 = vmatpush.bf16.msra.mxu2 %v569_v6  ;;  %597 = vmatpush.bf16.msra.mxu3 %v569_v6 }
  0x44   : > { %345 = vmatpush.bf16.msra.mxu0 %v568_v7  ;;  %598 = vmatpush.bf16.msra.mxu1 %v568_v7 }
  0x45   : > { %599 = vmatpush.bf16.msra.mxu2 %v568_v7  ;;  %600 = vmatpush.bf16.msra.mxu3 %v568_v7 }
  0x47   : > { %346 = vmatmul.bf16.vlgmr.msra.gmra.mxu0 %v564_v8  ;;  %351 = vmatmul.bf16.vlgmr.msra.gmra.mxu1 %v565_v9 }
  0x48   : > { %356 = vmatmul.bf16.vlgmr.msra.gmra.mxu2 %v566_v10  ;;  %361 = vmatmul.bf16.vlgmr.msra.gmra.mxu3 %v567_v11 }
  0xc4   : > { %v347_v13 = vpop.f32.mrf.mxu0  ;;  %v352_v14 = vpop.f32.mrf.mxu1 }
  0xc5   : > { %v348_v15 = vadd.f32 %v678_v12, %v347_v13  ;;  %v353_v16 = vadd.f32 %v678_v12, %v352_v14 }
  0xc7   : > { %367 = vst [vmem:[%s232_s27] sm:$0xff] %v348_v15 }
  0xc8   : > { %369 = vst [vmem:[%s232_s27 + $0x10] sm:$0xff] %v353_v16 }
  0xcb   : > { %v357_v17 = vpop.f32.mrf.mxu2  ;;  %v362_v18 = vpop.f32.mrf.mxu3 }
  0xcc   : > { %v358_v19 = vadd.f32 %v678_v12, %v357_v17  ;;  %v363_v20 = vadd.f32 %v678_v12, %v362_v18  ;;  %v349_v21 = vpop.f32.mrf.mxu0  ;;  %v354_v22 = vpop.f32.mrf.mxu1 }
  0xcd   : > { %v350_v23 = vadd.f32 %v678_v12, %v349_v21  ;;  %v355_v24 = vadd.f32 %v678_v12, %v354_v22 }
  0xce   : > { %371 = vst [vmem:[%s232_s27 + $0x20] sm:$0xff] %v358_v19 }
  0xcf   : > { %373 = vst [vmem:[%s232_s27 + $0x30] sm:$0xff] %v363_v20 }
  0xd0   : > { %368 = vst [vmem:[%s232_s27 + $0x8] sm:$0xff] %v350_v23 }
  0xd1   : > { %370 = vst [vmem:[%s232_s27 + $0x18] sm:$0xff] %v355_v24 }
  0xd3   : > { %v359_v25 = vpop.f32.mrf.mxu2  ;;  %v364_v26 = vpop.f32.mrf.mxu3 }
  0xd4   : > { %v360_v27 = vadd.f32 %v678_v12, %v359_v25  ;;  %v365_v28 = vadd.f32 %v678_v12, %v364_v26 }
  0xd6   : > { %372 = vst [vmem:[%s232_s27 + $0x28] sm:$0xff] %v360_v27 }
  0xd7   : > { %374 = vst [vmem:[%s232_s27 + $0x38] sm:$0xff] %v365_v28 }
  0xd8   : > { %766 = shalt.err (!%p763_p0)
}
  0xd9   : > { %s830_s6 = smov 128   ;;  %s831_s1 = smov 8  }
  0xda   : > { %607 = dma.vmem_to_hbm [thread:$0]  (%p934_p5), %s390_s24, 1024, %s392_s25, %s376_s15, %s830_s6, %s830_s6, %s831_s1  }
  0xdb PF: > { %s406_s20 = sand.u32 1, %s805_s12   ;;  %p618_p3 = pnand %p502_p11, %p901_p6 }
  0xdc   : > { %s407_s22 = scalar_lea.sflag [#allocation4], %s406_s20 }
  0xdd   : > { %p619_p7 = pneg %p618_p3 }
  0xdf   : > { %800 = dma.done.wait (%p619_p7), %s407_s22, 1024  }
  0xe0   : > { %802 = vsyncadd (%p619_p7), %s407_s22, 4294966272  ;;  %s20_s17 = sadd.s32 1, %s825_s17   ;;  %s1032_s12 = smov %s809_s13 }
  0xe1   : > { %p17_p9 = scmp.ge.s32.totalorder %s20_s17, 4   ;;  %s1033_s13 = smov %s813_s14 }
  0xe2   : > { %s1034_s14 = smov %s943_s18  ;;  %s1035_s15 = smov %s821_s16 }
  0xe3   : > { %s1036_s16 = smov %s1038_s5  ;;  %19 = sbr.rel (!%p17_p9) target bundleno = 9 (0x9), region = 84 }
  0xe8   :  { %413 = vsyncpa [#allocation3], 1 }
  0xe9   :  { %415 = vsyncpa [#allocation3 + $0x1], 1 }
  0xea   :  { %416 = vsyncpa [#allocation6], 1 }
  0xeb   :  { %417 = vsyncpa [#allocation4], 1 }
  0xec   :  { %419 = vsyncpa [#allocation4 + $0x1], 1 }

</bundles_post_ra>
